<compile_context>
chip_gen: v7x
topology: tpu7x:2x2x1
jax: 0.10.0
libtpu: 0.0.40
codegen_flags: <defaults>
</compile_context>

<pallas_src>
import jax
import jax.numpy as jnp
from jax import lax
from jax.experimental import pallas as pl
from jax.experimental.pallas import tpu as pltpu


# ----------------------------------------------------------------------------- kernels


def sam3e_gram_kernel(f_ref, wkT_ref, wq_ref, o_ref):
    """Gram-reassociated path (N >= D). Blocks: f/o (bb, N, D); weights (D, D).

    wkT = W_K^T; wq = W_Q (un-transposed, so the fused big matmul is a single
    trans-b batched dot with no in-kernel weight transpose).
    """
    f = f_ref[...]                                          # (bb, N, D) activation dtype
    bb, n, d = f.shape
    wkT = wkT_ref[...]                                      # (D, D)
    wq = wq_ref[...]                                        # (D, D)

    # G_b = F_b^T F_b: contract the token axis of both operands directly
    # (no explicit transpose). Symmetric (D, D) per batch element, f32 accumulate.
    g = jnp.einsum('bnd,bne->bde', f, f,
                   preferred_element_type=jnp.float32)      # (bb, D, D) f32

    # mt_b = G_b @ W_K^T = (W_K @ G_b)^T  (G symmetric). Tiny batched D^3 matmul;
    # operands kept in the activation dtype so the MXU stays on its fast path.
    wkT_b = jnp.broadcast_to(wkT, (bb, d, d))
    mt = jnp.einsum('bce,bef->bcf', g.astype(f.dtype), wkT_b,
                    preferred_element_type=jnp.float32)     # (bb, D, D) f32

    # Fused N-row matmul: stack [mt ; W_Q] on the sublane axis so ONE trans-b
    # batched dot produces [S@F | Q(F)] with a 2D-wide output (half the MXU
    # pushes / result-FIFO pops vs two separate (N, D) dots).
    rt = jnp.concatenate(
        [mt.astype(f.dtype), jnp.broadcast_to(wq, (bb, d, d))], axis=1)  # (bb, 2D, D)
    y = jnp.einsum('bnd,bkd->bnk', f, rt,
                   preferred_element_type=jnp.float32)      # (bb, N, 2D) f32

    sf = y[..., :d]                                         # S @ F
    qf = y[..., d:]                                         # F @ W_Q^T
    out = f.astype(jnp.float32) * sf + qf
    # TODO(synk): for D < 128 these are masked partial-lane stores; a lane-dense
    # flattened (bb, N*D) out view would need an in-kernel relayout that can eat
    # the win, so it is intentionally not done here (keep D % 128 == 0 in prod).
    o_ref[...] = out.astype(o_ref.dtype)


def sam3e_direct_kernel(f_ref, wkq_ref, o_ref):
    """Direct path (N < D): materializes the small S = (bb, N, N).

    wkq = concat([W_K^T, W_Q^T], axis=1) of shape (D, 2D): both weight-side
    matmuls are fused into a single (bb*N, D) @ (D, 2D) dot; the concat is done
    once in the wrapper (zero per-step cost).
    """
    f = f_ref[...]                                          # (bb, N, D)
    bb, n, d = f.shape
    wkq = wkq_ref[...]                                      # (D, 2D)

    f2 = f.reshape(bb * n, d)                               # layout no-op when N % 8 == 0
    y = jnp.dot(f2, wkq, preferred_element_type=jnp.float32)   # (bb*N, 2D) f32
    kf = y[:, :d].astype(f.dtype).reshape(bb, n, d)         # K(F)
    qf = y[:, d:].reshape(bb, n, d)                         # Q(F), f32

    # S = bmm(F, K(F)^T): contract the embedding axis of both operands
    # (batched trans-b dot, no explicit transpose).
    s = jnp.einsum('bnd,bmd->bnm', f, kf,
                   preferred_element_type=jnp.float32).astype(f.dtype)   # (bb, N, N)
    sf = jnp.einsum('bnm,bmd->bnd', s, f,
                    preferred_element_type=jnp.float32)     # (bb, N, D) f32

    out = f.astype(jnp.float32) * sf + qf
    o_ref[...] = out.astype(o_ref.dtype)


# ----------------------------------------------------------------------------- wrapper helpers


def _vmem_capacity_bytes():
    """Physical VMEM per core; conservative fallback if the query is unavailable."""
    try:
        cap = getattr(pltpu.get_tpu_info(), "vmem_capacity_bytes", None)
        if cap:
            return int(cap)
    except Exception:
        pass
    return 64 * 1024 * 1024      # v7x has the smallest VMEM (64 MiB / core)


def _per_batch_bytes(N, D, dsize, direct):
    """Rough per-batch-element VMEM working set (double-buffered I/O + f32 temps)."""
    io = 4 * dsize * N * D                       # 2x double-buffered input + output blocks
    f32_tmp = 4 * (2 * N * D + 4 * N * D)        # y (N,2D) + f32 f/sf/qf/out temporaries
    if direct:
        return io + f32_tmp + dsize * N * D + (4 + dsize) * N * N      # + kf + S
    return io + f32_tmp + (8 + 5 * dsize) * D * D                      # + g/mt/rt/broadcasts


def _pick_batch_block(B, per_batch, budget):
    bb = max(1, int(budget // max(per_batch, 1)))
    bb = min(bb, B)
    if B >= 2:
        # Keep >= 2 grid steps so both v7x TensorCores get work (costs at most one
        # extra ~0.35us step on single-TC v5e/v6e).
        bb = min(bb, -(-B // 2))
    return max(1, bb)


# ----------------------------------------------------------------------------- forward


def sam3e_forward(F, W_K, W_Q=None, *, use_residual=True, compute_dtype=None):
    """SAM3E forward. F: [B, N, D]; W_K, W_Q: [D, D] in PyTorch Linear layout (out x in).

    compute_dtype: optional dtype (e.g. jnp.bfloat16) to run the MXU dots in; output
    stays in F.dtype. Useful on v5e where f32 matmul is slow.
    """
    B, N, D = F.shape
    out_dtype = F.dtype

    cdt = jnp.dtype(compute_dtype) if compute_dtype is not None else jnp.dtype(F.dtype)
    f_in = F.astype(cdt)
    wkT = jnp.transpose(W_K).astype(cdt)                    # F @ wkT = K(F)
    if use_residual:
        wq = W_Q.astype(cdt)
    else:
        wq = jnp.zeros((D, D), cdt)

    dsize = cdt.itemsize
    vmem_cap = _vmem_capacity_bytes()
    vmem_limit = int(min(vmem_cap * 3 // 4, 96 * 1024 * 1024))
    budget = vmem_limit // 2                                 # headroom for compiler temps

    direct = N < D                                           # FLOP crossover of the two paths
    bb = _pick_batch_block(B, _per_batch_bytes(N, D, dsize, direct), budget)

    grid = -(-B // bb)                                       # cdiv grid
    b_pad = grid * bb
    if b_pad != B:                                           # zero-pad the batch (F=0 -> out=0)
        f_in = jnp.pad(f_in, ((0, b_pad - B), (0, 0), (0, 0)))

    act_spec = pl.BlockSpec((bb, N, D), lambda b: (b, 0, 0))

    if direct:
        kernel = sam3e_direct_kernel
        wkq = jnp.concatenate([wkT, jnp.transpose(wq)], axis=1)        # (D, 2D)
        weights = (wkq,)
        w_specs = [pl.BlockSpec((D, 2 * D), lambda b: (0, 0))]
    else:
        kernel = sam3e_gram_kernel
        weights = (wkT, wq)
        w_specs = [pl.BlockSpec((D, D), lambda b: (0, 0)),
                   pl.BlockSpec((D, D), lambda b: (0, 0))]

    out = pl.pallas_call(
        kernel,
        out_shape=jax.ShapeDtypeStruct((b_pad, N, D), out_dtype),
        grid_spec=pltpu.PrefetchScalarGridSpec(
            num_scalar_prefetch=0,
            grid=(grid,),
            in_specs=[act_spec] + w_specs,
            out_specs=act_spec,
        ),
        compiler_params=pltpu.CompilerParams(
            dimension_semantics=("parallel",),               # batch axis -> megacore sharding
            vmem_limit_bytes=vmem_limit,
        ),
    )(f_in, *weights)
    # TODO(synk): v7x with B == 1 and very large N can exceed VMEM / idle one TC;
    # needs an N-tiled two-pass gram variant (accumulate G over N tiles, then a
    # second pass for sf/qf). Not needed for CTR-typical N.

    if b_pad != B:
        out = out[:B]
    return out


# ----------------------------------------------------------------------------- reference & test


def sam3e_reference(F, W_K, W_Q, use_residual=True):
    """Pure-JAX reference matching the PyTorch forward literally."""
    KF = jnp.einsum('bnd,ed->bne', F, W_K)                   # Linear: F @ W_K^T
    S = jnp.einsum('bnd,bmd->bnm', F, KF)                    # bmm(F, KF^T)
    U = jnp.einsum('bnd,bmd->bnmd', F, F)
    out = (S[..., None] * U).sum(axis=2)
    if use_residual:
        out = out + jnp.einsum('bnd,ed->bne', F, W_Q)        # residual Q(F)
    return out


if __name__ == "__main__":
    key = jax.random.PRNGKey(0)
    kF, kK, kQ, kF2 = jax.random.split(key, 4)

    # --- small shape (N < D): direct kernel, fused weight matmul -------------
    B, N, D = 2, 8, 32
    F = jax.random.normal(kF, (B, N, D), dtype=jnp.float32)
    xavier_std = (2.0 / (D + D)) ** 0.5                      # xavier_normal_ for [D, D]
    W_K = xavier_std * jax.random.normal(kK, (D, D), dtype=jnp.float32)
    W_Q = xavier_std * jax.random.normal(kQ, (D, D), dtype=jnp.float32)

    out = jax.block_until_ready(sam3e_forward(F, W_K, W_Q))
    ref = sam3e_reference(F, W_K, W_Q)
    assert out.shape == (B, N, D)
    assert jnp.allclose(out, ref, atol=1e-3, rtol=1e-3), "direct path mismatch"

    # --- N >= D: batch-blocked gram kernel; odd B exercises cdiv grid + padding
    B2, N2 = 3, 64
    F2 = jax.random.normal(kF2, (B2, N2, D), dtype=jnp.float32)
    out2 = jax.block_until_ready(sam3e_forward(F2, W_K, W_Q))
    ref2 = sam3e_reference(F2, W_K, W_Q)
    assert out2.shape == (B2, N2, D)
    assert jnp.allclose(out2, ref2, atol=1e-3, rtol=1e-3), "gram path mismatch"

    # TODO(synk): training-mode dropout (p > 0) is not implemented; module
    # default is p=0 (inference), so it is a no-op here.
    print("KERNEL_OK")
</pallas_src>

<mosaic_0001>
module attributes {stable_mosaic.version = 11 : i64} {
  func.func @sam3e_direct_kernel(%arg0: i32, %arg1: memref<1x8x32xf32, #tpu.memory_space<vmem>>, %arg2: memref<32x64xf32, #tpu.memory_space<vmem>>, %arg3: memref<1x8x32xf32, #tpu.memory_space<vmem>>) attributes {dimension_semantics = [#tpu.dimension_semantics<parallel>], iteration_bounds = array<i64: 2>, scalar_prefetch = 0 : i64, scratch_operands = 0 : i64, tpu.core_type = #tpu.core_type<tc>, window_params = [{transform_indices = @transform_0, window_bounds = array<i64: 1, 8, 32>}, {pipeline_mode = #tpu.pipeline_mode<synchronous>, transform_indices = @transform_1, window_bounds = array<i64: 32, 64>}, {transform_indices = @transform_2, window_bounds = array<i64: 1, 8, 32>}]} {
    %c0 = arith.constant 0 : index
    %c0_0 = arith.constant 0 : index
    %c0_1 = arith.constant 0 : index
    %0 = vector.load %arg1[%c0, %c0_0, %c0_1] : memref<1x8x32xf32, #tpu.memory_space<vmem>>, vector<1x8x32xf32>
    %c0_2 = arith.constant 0 : index
    %c0_3 = arith.constant 0 : index
    %1 = vector.load %arg2[%c0_2, %c0_3] : memref<32x64xf32, #tpu.memory_space<vmem>>, vector<32x64xf32>
    %2 = vector.shape_cast %0 : vector<1x8x32xf32> to vector<8x32xf32>
    %cst = arith.constant dense<0.000000e+00> : vector<8x64xf32>
    %3 = tpu.matmul %2, %1, %cst {dimension_numbers = #tpu.dot_dimension_numbers<[1], [0], [0], [1], [0, 0, 1, 1], [], []>} : vector<8x32xf32>, vector<32x64xf32>, vector<8x64xf32> -> vector<8x64xf32>
    %4 = vector.extract_strided_slice %3 {offsets = [0, 0], sizes = [8, 32], strides = [1, 1]} : vector<8x64xf32> to vector<8x32xf32>
    %5 = vector.shape_cast %4 : vector<8x32xf32> to vector<1x8x32xf32>
    %6 = vector.extract_strided_slice %3 {offsets = [0, 32], sizes = [8, 32], strides = [1, 1]} : vector<8x64xf32> to vector<8x32xf32>
    %7 = vector.shape_cast %6 : vector<8x32xf32> to vector<1x8x32xf32>
    "tpu.trace_start"() <{level = 10 : i32, message = "bnd,bmd->bnm"}> : () -> ()
    %cst_4 = arith.constant dense<0.000000e+00> : vector<1x8x8xf32>
    %8 = tpu.matmul %0, %5, %cst_4 {dimension_numbers = #tpu.dot_dimension_numbers<[2], [2], [1], [1], [0, 0, 0, 1, 1, 1], [0], [0]>} : vector<1x8x32xf32>, vector<1x8x32xf32>, vector<1x8x8xf32> -> vector<1x8x8xf32>
    "tpu.trace_stop"() : () -> ()
    "tpu.trace_start"() <{level = 10 : i32, message = "bnm,bmd->bnd"}> : () -> ()
    %cst_5 = arith.constant dense<0.000000e+00> : vector<1x8x32xf32>
    %9 = tpu.matmul %8, %0, %cst_5 {dimension_numbers = #tpu.dot_dimension_numbers<[2], [1], [1], [2], [0, 0, 0, 1, 1, 2], [0], [0]>} : vector<1x8x8xf32>, vector<1x8x32xf32>, vector<1x8x32xf32> -> vector<1x8x32xf32>
    "tpu.trace_stop"() : () -> ()
    %10 = arith.mulf %0, %9 : vector<1x8x32xf32>
    %11 = arith.addf %10, %7 : vector<1x8x32xf32>
    %c0_6 = arith.constant 0 : index
    %c0_7 = arith.constant 0 : index
    %c0_8 = arith.constant 0 : index
    %12 = vector.load %arg3[%c0_6, %c0_7, %c0_8] : memref<1x8x32xf32, #tpu.memory_space<vmem>>, vector<1x8x32xf32>
    tpu.vector_store %arg3[%c0_6, %c0_7, %c0_8], %11 {strides = array<i32>} : memref<1x8x32xf32, #tpu.memory_space<vmem>>, vector<1x8x32xf32>,
    return
  }
  func.func @transform_0(%arg0: i32) -> (i32, i32, i32) {
    %c0_i32 = arith.constant 0 : i32
    %c0_i32_0 = arith.constant 0 : i32
    %c0_i32_1 = arith.constant 0 : i32
    return %arg0, %c0_i32, %c0_i32_0 : i32, i32, i32
  }
  func.func @transform_1(%arg0: i32) -> (i32, i32) {
    %c0_i32 = arith.constant 0 : i32
    %c0_i32_0 = arith.constant 0 : i32
    %c0_i32_1 = arith.constant 0 : i32
    return %c0_i32, %c0_i32_0 : i32, i32
  }
  func.func @transform_2(%arg0: i32) -> (i32, i32, i32) {
    %c0_i32 = arith.constant 0 : i32
    %c0_i32_0 = arith.constant 0 : i32
    %c0_i32_1 = arith.constant 0 : i32
    return %arg0, %c0_i32, %c0_i32_0 : i32, i32, i32
  }
}

</mosaic_0001>

<bundles_post_ra>
// kernel: tpu_custom_call.1
= control target key start
LH: loop header
LB: loop body
LE: loop exit
PB: predicated region body
PF: predicated region fallthrough
CT: control target
= control target key end

     0   :  { %7 = vsyncpa [#allocation3], 0  ;;  %s978_s0 = inlined_call_operand.hbm [shape: f32[2,8,32], index: 0, kind: input, shape index: {}]   ;;  %s979_s1 = inlined_call_operand.hbm [shape: f32[32,64], index: 1, kind: input, shape index: {}]   ;;  %s980_s2 = inlined_call_operand.hbm [shape: f32[2,8,32], index: 2, kind: output, shape index: {}]  }
   0x1   :  { %9 = vsyncpa [#allocation3 + $0x1], 0 }
   0x2   :  { %10 = vsyncpa [#allocation6], 0 }
   0x3   :  { %11 = vsyncpa [#allocation4], 0 }
   0x4   :  { %13 = vsyncpa [#allocation4 + $0x1], 0  ;;  %s771_s9 = smov 0   ;;  %s773_s10 = smov 0  }
   0x5   :  { %s775_s11 = smov 0   ;;  %s777_s12 = smov 0  }
   0x6 LB: > { %s792_s13 = sadd.s32 4294967295, %s745_s12   ;;  %s500_s14 = sadd.s32 4294967294, %s745_s12   ;;  %s745_s12 = sphi %s777_s12, %s1000_s12   ;;  %s741_s11 = sphi %s775_s11, %s999_s11   ;;  %s737_s10 = sphi %s773_s10, %s998_s10   ;;  %s733_s9 = sphi %s771_s9, %s997_s9  }
   0x7   : > { %p39_p0 = scmp.ne.s32.totalorder %s737_s10, %s733_s9  ;;  %p981_p1 = scmp.eq.s32.totalorder %s792_s13, 0 }
   0x8   : > { %p90_p3 = scmp.eq.s32.totalorder %s500_s14, 1  ;;  %p501_p5 = scmp.ge.s32.totalorder %s745_s12, 1 }
   0x9   : > { %p801_p4 = por %p981_p1, %p39_p0  ;;  %p97_p7 = scmp.lt.s32.totalorder %s745_s12, 3 }
   0xa   : > { %p806_p6 = por %p90_p3, %p39_p0  ;;  %s747_s18 = smov [#allocation5]  }
   0xb   : > { %s984_s15 = scalar_select %p801_p4, 1, 0 }
   0xc   : > { %s985_s16 = scalar_select %p806_p6, 1, 0 }
   0xd   : > { %p811_p8 = pnand %p501_p5, %p97_p7  ;;  %s109_s19 = sshll.u32 %s747_s18, 4  ;;  %s815_s19 = int_to_ptr.vmem [resolvable:$true] %s109_s19 }
   0xe   : > { %s827_s21 = sadd.s32 1, %s745_s12   ;;  %s26_s22 = sadd.s32 1, %s741_s11 }
   0xf   : > { %s986_s17 = scalar_select %p811_p8, 1, 0 }
  0x10   : > { %p562_p9 = pneg %p811_p8  ;;  %s23_s23 = ssub.s32 %s745_s12, %s827_s21 }
  0x11   : > { %s617_s26 = scalar_lea.hbm %s979_s1, 512 }
  0x12   : > { %p822_p11 = pnand %p562_p9, %p981_p1  ;;  %p618_p12 = scmp.ne.s32.totalorder %s979_s1, %s617_s26 }
  0x13   : > { %p624_p5 = scmp.lt.u32.totalorder %s617_s26, %s979_s1 }
  0x14   : > { %p619_p13 = pneg %p822_p11 }
  0x16   : > { %p620_p0 = pnand %p619_p13, %p618_p12 }
  0x18   : > { %p621_p3 = pneg %p620_p0 }
  0x1a   : > { %p626_p7 = pnand %p624_p5, %p621_p3 }
  0x1c   : > { %629 = shalt.err (!%p626_p7)
}
  0x1d   : > { %s630_s3 = scalar_lea.vmem %s815_s19, 512  ;;  %p638_p2 = scmp.lt.s32.totalorder %s815_s19, %s815_s19 }
  0x1e   : > { %p631_p9 = scmp.ne.s32.totalorder %s815_s19, %s630_s3  ;;  %p639_p6 = scmp.lt.s32.totalorder %s630_s3, %s630_s3 }
  0x20   : > { %p633_p10 = pnand %p631_p9, %p619_p13  ;;  %p640_p4 = por %p639_p6, %p638_p2 }
  0x22   : > { %p634_p1 = pneg %p633_p10 }
  0x24   : > { %p641_p8 = pnand %p640_p4, %p634_p1 }
  0x26   : > { %644 = shalt.err (!%p641_p8)
}
  0x27   : > { %s748_s4 = smov 128   ;;  %s749_s5 = smov 8  }
  0x28   : > { %565 = dma.hbm_to_vmem [thread:$0]  (!%p822_p11), %s979_s1, 512, %s815_s19, [#allocation6], %s748_s4, %s748_s4, %s749_s5  }
  0x29   : > { %p24_p2 = scmp.eq.s32.totalorder %s23_s23, 0  ;;  %p33_p1 = scmp.ne.s32.totalorder %s741_s11, %s737_s10 }
  0x2a   : > { %p34_p4 = scmp.eq.s32.totalorder %s745_s12, 0  ;;  %p575_p6 = scmp.lt.s32.totalorder %s745_s12, 2 }
  0x2b   : > { %s858_s8 = scalar_select %p24_p2, %s741_s11, %s26_s22  }
  0x2c   : > { %p35_p8 = por %p34_p4, %p33_p1  ;;  %p988_p10 = scmp.eq.s32.totalorder %s792_s13, 1 }
  0x2d   : > { %s123_s18 = sand.u32 1, %s741_s11   ;;  %s505_s24 = sshll.u32 %s745_s12, 7 }
  0x2e   : > { %p862_p12 = por %p988_p10, %p33_p1  ;;  %s504_s25 = sshll.u32 %s123_s18, 3 }
  0x2f   : > { %s871_s27 = scalar_lea.hbm %s978_s0, %s505_s24  ;;  %s127_s19 = scalar_lea.vmem [#allocation2], %s504_s25 }
  0x30   : > { %s134_s22 = sshll.u32 %s127_s19, 4  ;;  %p873_p11 = pnand %p575_p6, %p35_p8  ;;  %s877_s22 = int_to_ptr.vmem [resolvable:$true] %s134_s22 }
  0x31   : > { %s124_s28 = scalar_lea.sflag [#allocation3], %s123_s18  ;;  %s645_s29 = scalar_lea.hbm %s871_s27, 128 }
  0x32   : > { %p646_p13 = scmp.ne.s32.totalorder %s871_s27, %s645_s29  ;;  %p647_p0 = pneg %p873_p11 }
  0x33   : > { %s650_s4 = scalar_lea.hbm %s978_s0, 256  ;;  %p651_p7 = scmp.lt.u32.totalorder %s871_s27, %s978_s0 }
  0x34   : > { %p648_p3 = pnand %p647_p0, %p646_p13  ;;  %p652_p9 = scmp.lt.u32.totalorder %s650_s4, %s645_s29 }
  0x35   : > { %p654_p1 = scmp.lt.u32.totalorder %s645_s29, %s871_s27 }
  0x36   : > { %p649_p5 = pneg %p648_p3  ;;  %p653_p2 = por %p652_p9, %p651_p7 }
  0x38   : > { %p655_p4 = por %p654_p1, %p653_p2 }
  0x3a   : > { %p656_p6 = pnand %p655_p4, %p649_p5 }
  0x3c   : > { %659 = shalt.err (!%p656_p6)
}
  0x3d   : > { %s660_s7 = scalar_lea.vmem %s877_s22, 128  ;;  %s750_s18 = smov [#allocation2]  }
  0x3e   : > { %p661_p8 = scmp.ne.s32.totalorder %s877_s22, %s660_s7  ;;  %s665_s24 = sshll.u32 %s750_s18, 4  ;;  %s666_s24 = int_to_ptr.vmem [resolvable:$false] %s665_s24 }
  0x3f   : > { %s667_s25 = scalar_lea.vmem %s666_s24, 256  ;;  %p668_p3 = scmp.lt.s32.totalorder %s877_s22, %s666_s24 }
  0x40   : > { %p663_p10 = pnand %p661_p8, %p647_p0  ;;  %p669_p7 = scmp.lt.s32.totalorder %s667_s25, %s660_s7 }
  0x42   : > { %p664_p13 = pneg %p663_p10  ;;  %p670_p9 = por %p669_p7, %p668_p3 }
  0x44   : > { %p671_p2 = pnand %p670_p9, %p664_p13 }
  0x46   : > { %674 = shalt.err (!%p671_p2)
}
  0x47   : > { %569 = dma.hbm_to_vmem [thread:$0]  (!%p873_p11), %s871_s27, 128, %s877_s22, %s124_s28  }
  0x48   : > { %p991_p5 = scmp.ne.s32.totalorder %s986_s17, 0 }
  0x49   : > { %s907_s20 = sand.u32 (!%p991_p5), 1, %s737_s10   ;;  %p992_p0 = scmp.ne.s32.totalorder (!%p991_p5), %s984_s15, 0 }
  0x4a   : > { %143 = sbr.rel (%p991_p5) target bundleno = 752 (0x2f0), region = 28  ;;  %s507_s26 = sshll.u32 (!%p991_p5), %s907_s20, 3 }
  0x4b   : > { %s146_s19 = scalar_lea.sflag (!%p991_p5), [#allocation3], %s907_s20  ;;  %s149_s29 = scalar_lea.vmem (!%p991_p5), [#allocation2], %s507_s26 }
  0x51   : > { %720 = dma.done.wait (%p992_p0), %s146_s19, 128  }
  0x52   : > { %722 = vsyncadd (%p992_p0), %s146_s19, 4294967168  ;;  %p993_p11 = scmp.eq.s32.totalorder %s792_s13, 0 }
  0x54   : > { %724 = dma.done.wait (%p993_p11), [#allocation6], 512   ;;  %p994_p1 = pmov %p993_p11 }
  0x55   : > { %v751_v0 = vmov 0.0|0.0   ;;  %vm752_vm0 = vmmov 0   ;;  %v753_v1 = vmov 0.0   ;;  %v175_v2 = vld [vmem:[#allocation5] sm:$0xff]  ;;  %v176_v3 = vld [vmem:[#allocation5 + $0x8] sm:$0xff]  ;;  %v177_v4 = vld [vmem:[#allocation5 + $0x10] sm:$0xff] }
  0x56   : > { %726 = vsyncadd (%p994_p1), [#allocation6], 4294966784  ;;  %548 = vmatprep.subr.bf16.mxu0 %v751_v0  ;;  %535 = vmatprep.mubr.msk.f32.mxu0 %vm752_vm0, %v753_v1  ;;  %v549_v5 = vpack.c.bf16 %v176_v3, %v175_v2  ;;  %v178_v6 = vld [vmem:[#allocation5 + $0x18] sm:$0xff]  ;;  %vm179_vm1 = vcmask 261120   ;;  %s754_s15 = smov 96   ;;  %vm326_vm2 = vcmask 64512  }
  0x57   : > { %538 = vmatprep.subr.mxu1 %v753_v1  ;;  %540 = vmatprep.mubr.msk.f32.mxu1 %vm752_vm0, %v753_v1  ;;  %v552_v7 = vpack.c.bf16 %v178_v6, %v177_v4  ;;  %v174_v8 = vld [vmem:[%s149_s29] sm:$0xff]  ;;  %s515_s17 = sshll.u32 %s792_s13, 7  ;;  %s173_s27 = scalar_lea.vmem [#allocation7], %s507_s26 }
  0x58   : > { %550 = vmatpush3.bf16.msra.mxu0 %v549_v5  ;;  %s420_s22 = sshll.u32 %s173_s27, 4  ;;  %s933_s30 = scalar_lea.hbm %s980_s2, %s515_s17  ;;  %s935_s22 = int_to_ptr.vmem [resolvable:$true] %s420_s22 }
  0x59   : > { %551 = vmatprep.subr.bf16.mxu0 %v751_v0  ;;  %s407_s13 = scalar_lea.sflag [#allocation4], %s907_s20  ;;  %s675_s3 = scalar_lea.vmem %s935_s22, 128 }
  0x5a   : > { %p676_p4 = scmp.ne.s32.totalorder %s935_s22, %s675_s3  ;;  %s755_s4 = smov [#allocation7]  }
  0x5b   : > { %s679_s5 = sshll.u32 %s755_s4, 4  ;;  %s680_s5 = int_to_ptr.vmem [resolvable:$false] %s679_s5 }
  0x5c   : > { %553 = vmatpush3.bf16.msra.mxu0 %v552_v7  ;;  %p677_p6 = pnand %p676_p4, %p862_p12  ;;  %s681_s6 = scalar_lea.vmem %s680_s5, 256 }
  0x5d   : > { %p682_p10 = scmp.lt.s32.totalorder %s935_s22, %s680_s5  ;;  %p683_p13 = scmp.lt.s32.totalorder %s681_s6, %s675_s3 }
  0x5e   : > { %p678_p8 = pneg %p677_p6 }
  0x5f   : > { %536 = vmatmul.mubr.msk.f32.vlgmr.msra.gmra.mrb[0].mxu0 %vm179_vm1, %v174_v8  ;;  %p684_p3 = por %p683_p13, %p682_p10 }
  0x61   : > { %p685_p7 = pnand %p684_p3, %p678_p8 }
 0x132   : > { %v249_v9 = vpop.f32.mrb[0].mxu0 }
 0x133   : > { %v537_v10 = vpop.f32.mrb[1].mxu0  ;;  %539 = vmatpush3.xpose.msk.msra.mxu1 %vm179_vm1, %v249_v9  ;;  %401 = vrot.lane.b32.xlu0 %v249_v9, %s754_s15 }
 0x134   : > { %543 = vmatprep.subr.mxu1 %v753_v1 }
 0x136   : > { %541 = vmatmul.mubr.msk.f32.vlgmr.msra.gmra.mrb[0].mxu1 %vm179_vm1, %v174_v8 }
 0x137   : > { %544 = vmatpush3.msra.mxu1 %v174_v8  ;;  %545 = vmatprep.mubr.msk.f32.mxu1 %vm752_vm0, %v753_v1 }
 0x1a5   : > { %v402_v16 = vpop.permute.xlu0 %401 }
 0x209   : > { %v322_v11 = vpop.f32.mrb[0].mxu1 }
 0x20a   : > { %v542_v12 = vpop.f32.mrb[1].mxu1  ;;  %546 = vmatmul.mubr.msk.f32.vlgmr.msra.gmra.mrb[2].mxu1 %vm326_vm2, %v322_v11 }
 0x2dd   : > { %v396_v13 = vpop.f32.mrb[2].mxu1 }
 0x2de   : > { %v400_v14 = vmul.f32 %v396_v13, %v174_v8  ;;  %v547_v15 = vpop.f32.mrb[3].mxu1 }
 0x2e0   : > { %v404_v17 = vadd.f32 %v402_v16, %v400_v14 }
 0x2e2   : > { %405 = vst.msk [vmem:[%s173_s27] sm:$0xff] %vm179_vm1, %v404_v17 }
 0x2e3   : > { %688 = shalt.err (!%p685_p7)
}
 0x2e4   : > { %s689_s7 = scalar_lea.hbm %s933_s30, 128  ;;  %s693_s25 = scalar_lea.hbm %s980_s2, 256 }
 0x2e5   : > { %p690_p9 = scmp.ne.s32.totalorder %s933_s30, %s689_s7  ;;  %p694_p0 = scmp.lt.u32.totalorder %s933_s30, %s980_s2 }
 0x2e6   : > { %p695_p11 = scmp.lt.u32.totalorder %s693_s25, %s689_s7  ;;  %p697_p4 = scmp.lt.u32.totalorder %s689_s7, %s933_s30 }
 0x2e7   : > { %p691_p2 = pnand %p690_p9, %p862_p12 }
 0x2e8   : > { %p696_p1 = por %p695_p11, %p694_p0 }
 0x2e9   : > { %p692_p5 = pneg %p691_p2 }
 0x2ea   : > { %p698_p6 = por %p697_p4, %p696_p1 }
 0x2ec   : > { %p699_p8 = pnand %p698_p6, %p692_p5 }
 0x2ee   : > { %702 = shalt.err (!%p699_p8)
}
 0x2ef   : > { %560 = dma.vmem_to_hbm [thread:$0]  (%p862_p12), %s935_s22, 128, %s933_s30, %s407_s13  }
 0x2f0 PF: > { %s432_s19 = sand.u32 1, %s733_s9   ;;  %p995_p10 = scmp.ne.s32.totalorder %s985_s16, 0 }
 0x2f1   : > { %p996_p13 = scmp.ge.s32.totalorder %s745_s12, 2  ;;  %s433_s29 = scalar_lea.sflag [#allocation4], %s432_s19 }
 0x2f3   : > { %p571_p3 = pnand %p996_p13, %p995_p10 }
 0x2f5   : > { %728 = dma.done.wait (!%p571_p3), %s433_s29, 128  }
 0x2f6   : > { %730 = vsyncadd (!%p571_p3), %s433_s29, 4294967168  ;;  %p16_p7 = scmp.ge.s32.totalorder %s827_s21, 4   ;;  %s997_s9 = smov %s737_s10 }
 0x2f7   : > { %s998_s10 = smov %s741_s11  ;;  %s999_s11 = smov %s858_s8 }
 0x2f8   : > { %s1000_s12 = smov %s827_s21  ;;  %18 = sbr.rel (!%p16_p7) target bundleno = 6 (0x6), region = 77 }
 0x2ff   :  { %438 = vsyncpa [#allocation3], 1 }
 0x300   :  { %440 = vsyncpa [#allocation3 + $0x1], 1 }
 0x301   :  { %441 = vsyncpa [#allocation6], 1 }
 0x302   :  { %442 = vsyncpa [#allocation4], 1 }
 0x303   :  { %444 = vsyncpa [#allocation4 + $0x1], 1 }

</bundles_post_ra>
